<compile_context>
chip_gen: v6e
topology: v6e:2x2x1
jax: 0.10.0
libtpu: 0.0.40
codegen_flags: <defaults>
</compile_context>

<pallas_src>
import functools

import jax
import jax.numpy as jnp
from jax.experimental import pallas as pl
from jax.experimental.pallas import tpu as pltpu


# ----------------------------------------------------------------------------
# Fused kernel: both stages, all axes, three matmuls, one invocation.
# ----------------------------------------------------------------------------
def _fused_kernel(x_ref, h0_ref, c0_ref, hdb_ref,
                  w1_ref, w2_ref, b2_ref, w3_ref, b3_ref,
                  out_ref, *, naxis, H, A):
    NH, NA = naxis * H, naxis * A

    def mm(u, w_ref):
        w = w_ref[...]
        return jnp.dot(u.astype(w.dtype), w, preferred_element_type=jnp.float32)

    x = x_ref[...]                                             # (seq, in)
    hdb = hdb_ref[...]                                         # (seq, A)
    h0c = jnp.concatenate([h0_ref[a] for a in range(naxis)], axis=-1)   # (seq, NH)
    c0c = jnp.concatenate([c0_ref[a] for a in range(naxis)], axis=-1)   # (seq, NH)

    # ---------------- Stage 1: branch cell (all axes fused) ----------------
    u1 = jnp.concatenate([x, h0c], axis=-1)                    # (seq, in + NH)
    s1 = mm(u1, w1_ref)                                        # (seq, 5*NH): [I|O|G|Fx|Fh]
    sg = jax.nn.sigmoid(s1[:, 0:2 * NH])                       # one wide sigmoid
    ig = sg[:, 0:NH]
    og = sg[:, NH:2 * NH]
    gg = jnp.tanh(s1[:, 2 * NH:3 * NH])
    fx = s1[:, 3 * NH:4 * NH]                                  # x @ W_if
    fh = s1[:, 4 * NH:5 * NH]                                  # h @ W_hf
    # diff_percent: reference divides by x@W_if with no epsilon; semantics kept.
    inv = pl.reciprocal(fx, approx=True)                       # EUP approx path
    inv = inv * (2.0 - fx * inv)                               # Newton step 1 (VPU)
    inv = inv * (2.0 - fx * inv)                               # Newton step 2 (VPU)
    fg = 1.0 - jnp.abs((fx - fh) * inv)
    c1 = fg * c0c + ig * gg                                    # (seq, NH)
    h1 = og * jnp.tanh(c1)                                     # (seq, NH)

    # ---------------- Stage 2: DB cell gates + c_t projection ----------------
    u2 = jnp.concatenate([h1, c1, hdb], axis=-1)               # (seq, 2*NH + A)
    s2 = mm(u2, w2_ref) + b2_ref[...]                          # (seq, 4*NA): [I|F|C|Ct]
    sg2 = jax.nn.sigmoid(s2[:, 0:2 * NA])                      # one wide sigmoid
    i_db = sg2[:, 0:NA]
    f_db = sg2[:, NA:2 * NA]
    c_db = jnp.tanh(s2[:, 2 * NA:3 * NA])
    ct = s2[:, 3 * NA:4 * NA]                                  # c1 @ W_ict
    i_cell = i_db * ct
    c_cell = f_db * c_db + i_cell

    # ---------------- Stage 3: output projections ----------------
    u3 = jnp.concatenate([i_cell, c_cell], axis=-1)            # (seq, 2*NA)
    t = mm(u3, w3_ref) + b3_ref[...]                           # (seq, 2*NA): [T1|T2]
    hdb_new = jax.nn.sigmoid(t[:, NA:2 * NA]) * jnp.tanh(t[:, 0:NA])

    # ---------------- per-axis output slabs: [h1 | c1 | h_db] ----------------
    for a in range(naxis):
        out_ref[a] = jnp.concatenate(
            [h1[:, a * H:(a + 1) * H],
             c1[:, a * H:(a + 1) * H],
             hdb_new[:, a * A:(a + 1) * A]], axis=-1)


# ----------------------------------------------------------------------------
# One-time weight packing (hoisted out of the forward pass).
# ----------------------------------------------------------------------------
def pack_params(params, *, matmul_dtype=jnp.float32):
    wx, wh = params["wx"], params["wh"]          # (N,4,in,H)/(N,4,H,H), gates [i,f,g,o]
    wih, whh = params["wih"], params["whh"]      # (N,3,H,A)/(N,3,A,A), gates [i,f,c]
    wict = params["wict"]                        # (N,H,A)
    wilc, wilh = params["wilc"], params["wilh"]  # (N,A,A)
    b = params["b"]                              # (N,3,A)
    N, _, I, H = wx.shape
    A = wih.shape[-1]
    NH, NA = N * H, N * A

    def cat(w):      # (N,K,M) -> (K, N*M), axis-major columns
        return jnp.transpose(w, (1, 0, 2)).reshape(w.shape[1], N * w.shape[2])

    def bdiag(w):    # (N,K,M) -> block-diagonal (N*K, N*M)
        K, M = w.shape[1], w.shape[2]
        out = jnp.zeros((N * K, N * M), w.dtype)
        for a in range(N):
            out = out.at[a * K:(a + 1) * K, a * M:(a + 1) * M].set(w[a])
        return out

    z = lambda r, c: jnp.zeros((r, c), jnp.float32)

    # Stage 1: rows = [x | h0_0..h0_{N-1}], cols = [I | O | G | Fx | Fh] (NH each).
    w1 = jnp.concatenate([
        jnp.concatenate([cat(wx[:, 0]), cat(wx[:, 3]), cat(wx[:, 2]),
                         cat(wx[:, 1]), z(I, NH)], axis=1),
        jnp.concatenate([bdiag(wh[:, 0]), bdiag(wh[:, 3]), bdiag(wh[:, 2]),
                         z(NH, NH), bdiag(wh[:, 1])], axis=1),
    ], axis=0)

    # Stage 2: rows = [h1 | c1 | hdb], cols = [I | F | C | Ct] (NA each).
    w2 = jnp.concatenate([
        jnp.concatenate([bdiag(wih[:, 0]), bdiag(wih[:, 1]), bdiag(wih[:, 2]),
                         z(NH, NA)], axis=1),
        jnp.concatenate([z(NH, 3 * NA), bdiag(wict)], axis=1),
        jnp.concatenate([cat(whh[:, 0]), cat(whh[:, 1]), cat(whh[:, 2]),
                         z(A, NA)], axis=1),
    ], axis=0)
    b2 = jnp.concatenate([b[:, 0].reshape(NA), b[:, 1].reshape(NA),
                          b[:, 2].reshape(NA), jnp.zeros((NA,), jnp.float32)]
                         ).reshape(1, 4 * NA)

    # Stage 3: rows = [i_cell | c_cell], cols = [T1 | T2] (NA each).
    w3 = jnp.concatenate([
        jnp.concatenate([bdiag(wilc), z(NA, NA)], axis=1),
        jnp.concatenate([z(NA, NA), bdiag(wilh)], axis=1),
    ], axis=0)
    b3 = jnp.concatenate([params["bilc"].reshape(NA),
                          params["bilh"].reshape(NA)]).reshape(1, 2 * NA)

    return {"w1": w1.astype(matmul_dtype), "w2": w2.astype(matmul_dtype),
            "w3": w3.astype(matmul_dtype), "b2": b2, "b3": b3,
            "dims": (N, I, H, A)}


# ----------------------------------------------------------------------------
# Forward wrapper: pallas_call + contiguous split (no transposes).
# ----------------------------------------------------------------------------
def branch_cell_forward(packed, x, branch_state, db_state=None):
    """Returns ((h_m, c_m), h_db) matching Branch_Cell.forward."""
    h0, c0 = branch_state
    naxis, _, H, A = packed["dims"]
    seq = x.shape[0]
    hdb0 = jnp.zeros((seq, A), jnp.float32) if db_state is None else db_state

    # Pad M (sublane dim) to a multiple of 8; batch seqs/timesteps here for prod.
    seq_p = ((seq + 7) // 8) * 8
    if seq_p != seq:
        x = jnp.pad(x, ((0, seq_p - seq), (0, 0)))
        hdb0 = jnp.pad(hdb0, ((0, seq_p - seq), (0, 0)))
        h0 = jnp.pad(h0, ((0, 0), (0, seq_p - seq), (0, 0)))
        c0 = jnp.pad(c0, ((0, 0), (0, seq_p - seq), (0, 0)))

    out_w = 2 * H + A
    inputs = (x, h0, c0, hdb0, packed["w1"], packed["w2"], packed["b2"],
              packed["w3"], packed["b3"])
    nbytes = sum(int(a.size) * a.dtype.itemsize for a in inputs)
    nbytes += naxis * seq_p * out_w * 4
    vmem_limit = int(min(32 * 1024 * 1024, max(6 * nbytes, 16 * 1024 * 1024)))

    kernel = functools.partial(_fused_kernel, naxis=naxis, H=H, A=A)
    vmem = pl.BlockSpec(memory_space=pltpu.MemorySpace.VMEM)

    out = pl.pallas_call(
        kernel,
        out_shape=jax.ShapeDtypeStruct((naxis, seq_p, out_w), jnp.float32),
        in_specs=[vmem] * len(inputs),
        out_specs=vmem,
        compiler_params=pltpu.CompilerParams(vmem_limit_bytes=vmem_limit),
    )(*inputs)

    out = out[:, :seq]
    return (out[..., 0:H], out[..., H:2 * H]), out[..., 2 * H:2 * H + A]


# ----------------------------------------------------------------------------
# Parameter construction (deterministic, Xavier-uniform style)
# ----------------------------------------------------------------------------
def _xavier(key, shape):
    fan_in, fan_out = shape[-2], shape[-1]
    bound = (6.0 / (fan_in + fan_out)) ** 0.5
    return jax.random.uniform(key, shape, jnp.float32, -bound, bound)


def make_params(key, input_size, hidden_size, ahidden_size, naxis):
    ks = iter(jax.random.split(key, 16))
    return {
        "wx": _xavier(next(ks), (naxis, 4, input_size, hidden_size)),   # [i,f,g,o]
        "wh": _xavier(next(ks), (naxis, 4, hidden_size, hidden_size)),
        "wih": _xavier(next(ks), (naxis, 3, hidden_size, ahidden_size)),  # [i,f,c]
        "whh": _xavier(next(ks), (naxis, 3, ahidden_size, ahidden_size)),
        "b": jnp.zeros((naxis, 3, ahidden_size), jnp.float32),           # b_i + b_h (zeros)
        "wict": _xavier(next(ks), (naxis, hidden_size, ahidden_size)),
        "wilc": _xavier(next(ks), (naxis, ahidden_size, ahidden_size)),
        "bilc": jnp.zeros((naxis, 1, ahidden_size), jnp.float32),
        "wilh": _xavier(next(ks), (naxis, ahidden_size, ahidden_size)),
        "bilh": jnp.zeros((naxis, 1, ahidden_size), jnp.float32),
    }


# ----------------------------------------------------------------------------
# Pure-JAX reference (mirrors the PyTorch module).
# ----------------------------------------------------------------------------
def _reference_forward(params, x, h0, c0, hdb0):
    naxis = h0.shape[0]
    hp = jax.lax.Precision.HIGHEST

    def mm(a, w):
        return jnp.dot(a, w, precision=hp)

    h_m, c_m, h_db = [], [], []
    for a in range(naxis):
        hx, cx = h0[a], c0[a]
        wx, wh = params["wx"][a], params["wh"][a]
        a_f = mm(x, wx[1]); b_f = mm(hx, wh[1])
        fg = 1.0 - jnp.abs((a_f - b_f) / a_f)
        ig = jax.nn.sigmoid(mm(x, wx[0]) + mm(hx, wh[0]))
        gg = jnp.tanh(mm(x, wx[2]) + mm(hx, wh[2]))
        og = jax.nn.sigmoid(mm(x, wx[3]) + mm(hx, wh[3]))
        c1 = fg * cx + ig * gg
        h1 = og * jnp.tanh(c1)

        ct = mm(c1, params["wict"][a])
        i_db = jax.nn.sigmoid(mm(h1, params["wih"][a, 0]) + mm(hdb0, params["whh"][a, 0]) + params["b"][a, 0])
        f_db = jax.nn.sigmoid(mm(h1, params["wih"][a, 1]) + mm(hdb0, params["whh"][a, 1]) + params["b"][a, 1])
        c_db = jnp.tanh(mm(h1, params["wih"][a, 2]) + mm(hdb0, params["whh"][a, 2]) + params["b"][a, 2])
        i_cell = i_db * ct
        c_cell = f_db * c_db + i_cell
        t1 = mm(i_cell, params["wilc"][a]) + params["bilc"][a]
        t2 = mm(c_cell, params["wilh"][a]) + params["bilh"][a]
        h_m.append(h1); c_m.append(c1)
        h_db.append(jax.nn.sigmoid(t2) * jnp.tanh(t1))
    return jnp.stack(h_m), jnp.stack(c_m), jnp.stack(h_db)


if __name__ == "__main__":
    seq, input_size, hidden_size, ahidden_size, naxis = 8, 16, 32, 32, 2

    key = jax.random.PRNGKey(0)
    k_p, k_x, k_h, k_c = jax.random.split(key, 4)

    params = make_params(k_p, input_size, hidden_size, ahidden_size, naxis)
    x = jax.random.normal(k_x, (seq, input_size), jnp.float32)
    h0 = 0.1 * jax.random.normal(k_h, (naxis, seq, hidden_size), jnp.float32)
    c0 = 0.1 * jax.random.normal(k_c, (naxis, seq, hidden_size), jnp.float32)

    # Pack weights ONCE (hoisted out of the per-call forward).
    packed = pack_params(params, matmul_dtype=jnp.float32)

    (h_m, c_m), h_db = branch_cell_forward(packed, x, (h0, c0), db_state=None)
    jax.block_until_ready((h_m, c_m, h_db))

    assert h_m.shape == (naxis, seq, hidden_size)
    assert c_m.shape == (naxis, seq, hidden_size)
    assert h_db.shape == (naxis, seq, ahidden_size)
    assert bool(jnp.isfinite(h_m).all())
    assert bool(jnp.isfinite(c_m).all())
    assert bool(jnp.isfinite(h_db).all())

    # Correctness vs pure-JAX reference. diff_percent divides by x@W_if with no
    # epsilon (ill-conditioned near zero), so mask elements/rows with small |a_f|
    # and check the rest tightly.
    ref_hm, ref_cm, ref_hdb = _reference_forward(
        params, x, h0, c0, jnp.zeros((seq, ahidden_size), jnp.float32))
    a_f_ref = jnp.stack([x @ params["wx"][a, 1] for a in range(naxis)])  # (naxis, seq, H)
    elem_mask = jnp.abs(a_f_ref) >= 0.1
    row_mask = (jnp.abs(a_f_ref) >= 0.05).all(axis=-1)                   # (naxis, seq)

    def masked_max_err(a, b, m):
        return float(jnp.max(jnp.where(m, jnp.abs(a - b), 0.0)))

    assert masked_max_err(h_m, ref_hm, elem_mask) < 1e-3
    assert masked_max_err(c_m, ref_cm, elem_mask) < 1e-3
    assert masked_max_err(h_db, ref_hdb, row_mask[..., None]) < 1e-2

    # bf16-operand variant (recommended for production sizes): run + shape check.
    packed_bf16 = pack_params(params, matmul_dtype=jnp.bfloat16)
    (h_m16, c_m16), h_db16 = branch_cell_forward(packed_bf16, x, (h0, c0))
    jax.block_until_ready((h_m16, c_m16, h_db16))
    assert h_m16.shape == (naxis, seq, hidden_size)
    assert h_db16.shape == (naxis, seq, ahidden_size)

    print("KERNEL_OK")
</pallas_src>

<mosaic_0001>
module attributes {stable_mosaic.version = 11 : i64} {
  func.func @_fused_kernel(%arg0: memref<8x16xf32, #tpu.memory_space<vmem>>, %arg1: memref<2x8x32xf32, #tpu.memory_space<vmem>>, %arg2: memref<2x8x32xf32, #tpu.memory_space<vmem>>, %arg3: memref<8x32xf32, #tpu.memory_space<vmem>>, %arg4: memref<80x320xf32, #tpu.memory_space<vmem>>, %arg5: memref<160x256xf32, #tpu.memory_space<vmem>>, %arg6: memref<1x256xf32, #tpu.memory_space<vmem>>, %arg7: memref<128x128xf32, #tpu.memory_space<vmem>>, %arg8: memref<1x128xf32, #tpu.memory_space<vmem>>, %arg9: memref<2x8x96xf32, #tpu.memory_space<vmem>>) attributes {dimension_semantics = [], scalar_prefetch = 0 : i64, scratch_operands = 0 : i64, tpu.core_type = #tpu.core_type<tc>} {
    %c0 = arith.constant 0 : index
    %c0_0 = arith.constant 0 : index
    %0 = vector.load %arg0[%c0, %c0_0] : memref<8x16xf32, #tpu.memory_space<vmem>>, vector<8x16xf32>
    %c0_1 = arith.constant 0 : index
    %c0_2 = arith.constant 0 : index
    %1 = vector.load %arg3[%c0_1, %c0_2] : memref<8x32xf32, #tpu.memory_space<vmem>>, vector<8x32xf32>
    %c0_3 = arith.constant 0 : index
    %c0_4 = arith.constant 0 : index
    %c0_5 = arith.constant 0 : index
    %2 = vector.load %arg1[%c0_3, %c0_4, %c0_5] : memref<2x8x32xf32, #tpu.memory_space<vmem>>, vector<1x8x32xf32>
    %3 = vector.shape_cast %2 : vector<1x8x32xf32> to vector<8x32xf32>
    %c1 = arith.constant 1 : index
    %c0_6 = arith.constant 0 : index
    %c0_7 = arith.constant 0 : index
    %4 = vector.load %arg1[%c1, %c0_6, %c0_7] : memref<2x8x32xf32, #tpu.memory_space<vmem>>, vector<1x8x32xf32>
    %5 = vector.shape_cast %4 : vector<1x8x32xf32> to vector<8x32xf32>
    %6 = tpu.concatenate %3, %5 in 1 : vector<8x32xf32>, vector<8x32xf32> -> vector<8x64xf32>
    %c0_8 = arith.constant 0 : index
    %c0_9 = arith.constant 0 : index
    %c0_10 = arith.constant 0 : index
    %7 = vector.load %arg2[%c0_8, %c0_9, %c0_10] : memref<2x8x32xf32, #tpu.memory_space<vmem>>, vector<1x8x32xf32>
    %8 = vector.shape_cast %7 : vector<1x8x32xf32> to vector<8x32xf32>
    %c1_11 = arith.constant 1 : index
    %c0_12 = arith.constant 0 : index
    %c0_13 = arith.constant 0 : index
    %9 = vector.load %arg2[%c1_11, %c0_12, %c0_13] : memref<2x8x32xf32, #tpu.memory_space<vmem>>, vector<1x8x32xf32>
    %10 = vector.shape_cast %9 : vector<1x8x32xf32> to vector<8x32xf32>
    %11 = tpu.concatenate %8, %10 in 1 : vector<8x32xf32>, vector<8x32xf32> -> vector<8x64xf32>
    %12 = tpu.concatenate %0, %6 in 1 : vector<8x16xf32>, vector<8x64xf32> -> vector<8x80xf32>
    %c0_14 = arith.constant 0 : index
    %c0_15 = arith.constant 0 : index
    %13 = vector.load %arg4[%c0_14, %c0_15] : memref<80x320xf32, #tpu.memory_space<vmem>>, vector<80x320xf32>
    %cst = arith.constant dense<0.000000e+00> : vector<8x320xf32>
    %14 = tpu.matmul %12, %13, %cst {dimension_numbers = #tpu.dot_dimension_numbers<[1], [0], [0], [1], [0, 0, 1, 1], [], []>} : vector<8x80xf32>, vector<80x320xf32>, vector<8x320xf32> -> vector<8x320xf32>
    %15 = vector.extract_strided_slice %14 {offsets = [0, 0], sizes = [8, 128], strides = [1, 1]} : vector<8x320xf32> to vector<8x128xf32>
    %16 = arith.negf %15 : vector<8x128xf32>
    %17 = math.exp %16 : vector<8x128xf32>
    %cst_16 = arith.constant 1.000000e+00 : f32
    %18 = vector.broadcast %cst_16 : f32 to vector<8x128xf32>
    %19 = arith.addf %18, %17 : vector<8x128xf32>
    %20 = arith.divf %18, %19 : vector<8x128xf32>
    %21 = vector.extract_strided_slice %20 {offsets = [0, 0], sizes = [8, 64], strides = [1, 1]} : vector<8x128xf32> to vector<8x64xf32>
    %22 = vector.extract_strided_slice %20 {offsets = [0, 64], sizes = [8, 64], strides = [1, 1]} : vector<8x128xf32> to vector<8x64xf32>
    %23 = vector.extract_strided_slice %14 {offsets = [0, 128], sizes = [8, 64], strides = [1, 1]} : vector<8x320xf32> to vector<8x64xf32>
    %24 = math.tanh %23 : vector<8x64xf32>
    %25 = vector.extract_strided_slice %14 {offsets = [0, 192], sizes = [8, 64], strides = [1, 1]} : vector<8x320xf32> to vector<8x64xf32>
    %26 = vector.extract_strided_slice %14 {offsets = [0, 256], sizes = [8, 64], strides = [1, 1]} : vector<8x320xf32> to vector<8x64xf32>
    %27 = tpu.reciprocal %25 {approx = true} : vector<8x64xf32> -> vector<8x64xf32>
    %28 = arith.mulf %25, %27 : vector<8x64xf32>
    %cst_17 = arith.constant 2.000000e+00 : f32
    %29 = vector.broadcast %cst_17 : f32 to vector<8x64xf32>
    %30 = arith.subf %29, %28 : vector<8x64xf32>
    %31 = arith.mulf %27, %30 : vector<8x64xf32>
    %32 = arith.mulf %25, %31 : vector<8x64xf32>
    %cst_18 = arith.constant 2.000000e+00 : f32
    %33 = vector.broadcast %cst_18 : f32 to vector<8x64xf32>
    %34 = arith.subf %33, %32 : vector<8x64xf32>
    %35 = arith.mulf %31, %34 : vector<8x64xf32>
    %36 = arith.subf %25, %26 : vector<8x64xf32>
    %37 = arith.mulf %36, %35 : vector<8x64xf32>
    %38 = math.absf %37 : vector<8x64xf32>
    %cst_19 = arith.constant 1.000000e+00 : f32
    %39 = vector.broadcast %cst_19 : f32 to vector<8x64xf32>
    %40 = arith.subf %39, %38 : vector<8x64xf32>
    %41 = arith.mulf %40, %11 : vector<8x64xf32>
    %42 = arith.mulf %21, %24 : vector<8x64xf32>
    %43 = arith.addf %41, %42 : vector<8x64xf32>
    %44 = math.tanh %43 : vector<8x64xf32>
    %45 = arith.mulf %22, %44 : vector<8x64xf32>
    %46 = tpu.concatenate %45, %43, %1 in 1 : vector<8x64xf32>, vector<8x64xf32>, vector<8x32xf32> -> vector<8x160xf32>
    %c0_20 = arith.constant 0 : index
    %c0_21 = arith.constant 0 : index
    %47 = vector.load %arg5[%c0_20, %c0_21] : memref<160x256xf32, #tpu.memory_space<vmem>>, vector<160x256xf32>
    %cst_22 = arith.constant dense<0.000000e+00> : vector<8x256xf32>
    %48 = tpu.matmul %46, %47, %cst_22 {dimension_numbers = #tpu.dot_dimension_numbers<[1], [0], [0], [1], [0, 0, 1, 1], [], []>} : vector<8x160xf32>, vector<160x256xf32>, vector<8x256xf32> -> vector<8x256xf32>
    %c0_23 = arith.constant 0 : index
    %c0_24 = arith.constant 0 : index
    %49 = vector.load %arg6[%c0_23, %c0_24] : memref<1x256xf32, #tpu.memory_space<vmem>>, vector<1x256xf32>
    %50 = vector.broadcast %49 : vector<1x256xf32> to vector<8x256xf32>
    %51 = arith.addf %48, %50 : vector<8x256xf32>
    %52 = vector.extract_strided_slice %51 {offsets = [0, 0], sizes = [8, 128], strides = [1, 1]} : vector<8x256xf32> to vector<8x128xf32>
    %53 = arith.negf %52 : vector<8x128xf32>
    %54 = math.exp %53 : vector<8x128xf32>
    %cst_25 = arith.constant 1.000000e+00 : f32
    %55 = vector.broadcast %cst_25 : f32 to vector<8x128xf32>
    %56 = arith.addf %55, %54 : vector<8x128xf32>
    %57 = arith.divf %55, %56 : vector<8x128xf32>
    %58 = vector.extract_strided_slice %57 {offsets = [0, 0], sizes = [8, 64], strides = [1, 1]} : vector<8x128xf32> to vector<8x64xf32>
    %59 = vector.extract_strided_slice %57 {offsets = [0, 64], sizes = [8, 64], strides = [1, 1]} : vector<8x128xf32> to vector<8x64xf32>
    %60 = vector.extract_strided_slice %51 {offsets = [0, 128], sizes = [8, 64], strides = [1, 1]} : vector<8x256xf32> to vector<8x64xf32>
    %61 = math.tanh %60 : vector<8x64xf32>
    %62 = vector.extract_strided_slice %51 {offsets = [0, 192], sizes = [8, 64], strides = [1, 1]} : vector<8x256xf32> to vector<8x64xf32>
    %63 = arith.mulf %58, %62 : vector<8x64xf32>
    %64 = arith.mulf %59, %61 : vector<8x64xf32>
    %65 = arith.addf %64, %63 : vector<8x64xf32>
    %66 = tpu.concatenate %63, %65 in 1 : vector<8x64xf32>, vector<8x64xf32> -> vector<8x128xf32>
    %c0_26 = arith.constant 0 : index
    %c0_27 = arith.constant 0 : index
    %67 = vector.load %arg7[%c0_26, %c0_27] : memref<128x128xf32, #tpu.memory_space<vmem>>, vector<128x128xf32>
    %cst_28 = arith.constant dense<0.000000e+00> : vector<8x128xf32>
    %68 = tpu.matmul %66, %67, %cst_28 {dimension_numbers = #tpu.dot_dimension_numbers<[1], [0], [0], [1], [0, 0, 1, 1], [], []>} : vector<8x128xf32>, vector<128x128xf32>, vector<8x128xf32> -> vector<8x128xf32>
    %c0_29 = arith.constant 0 : index
    %c0_30 = arith.constant 0 : index
    %69 = vector.load %arg8[%c0_29, %c0_30] : memref<1x128xf32, #tpu.memory_space<vmem>>, vector<1x128xf32>
    %70 = vector.broadcast %69 : vector<1x128xf32> to vector<8x128xf32>
    %71 = arith.addf %68, %70 : vector<8x128xf32>
    %72 = vector.extract_strided_slice %71 {offsets = [0, 64], sizes = [8, 64], strides = [1, 1]} : vector<8x128xf32> to vector<8x64xf32>
    %73 = arith.negf %72 : vector<8x64xf32>
    %74 = math.exp %73 : vector<8x64xf32>
    %cst_31 = arith.constant 1.000000e+00 : f32
    %75 = vector.broadcast %cst_31 : f32 to vector<8x64xf32>
    %76 = arith.addf %75, %74 : vector<8x64xf32>
    %77 = arith.divf %75, %76 : vector<8x64xf32>
    %78 = vector.extract_strided_slice %71 {offsets = [0, 0], sizes = [8, 64], strides = [1, 1]} : vector<8x128xf32> to vector<8x64xf32>
    %79 = math.tanh %78 : vector<8x64xf32>
    %80 = arith.mulf %77, %79 : vector<8x64xf32>
    %81 = vector.extract_strided_slice %45 {offsets = [0, 0], sizes = [8, 32], strides = [1, 1]} : vector<8x64xf32> to vector<8x32xf32>
    %82 = vector.extract_strided_slice %43 {offsets = [0, 0], sizes = [8, 32], strides = [1, 1]} : vector<8x64xf32> to vector<8x32xf32>
    %83 = vector.extract_strided_slice %80 {offsets = [0, 0], sizes = [8, 32], strides = [1, 1]} : vector<8x64xf32> to vector<8x32xf32>
    %84 = tpu.concatenate %81, %82, %83 in 1 : vector<8x32xf32>, vector<8x32xf32>, vector<8x32xf32> -> vector<8x96xf32>
    %c0_32 = arith.constant 0 : index
    %c0_33 = arith.constant 0 : index
    %c0_34 = arith.constant 0 : index
    %85 = vector.load %arg9[%c0_32, %c0_33, %c0_34] : memref<2x8x96xf32, #tpu.memory_space<vmem>>, vector<1x8x96xf32>
    %86 = vector.shape_cast %85 : vector<1x8x96xf32> to vector<8x96xf32>
    %87 = vector.shape_cast %84 : vector<8x96xf32> to vector<1x8x96xf32>
    tpu.vector_store %arg9[%c0_32, %c0_33, %c0_34], %87 {strides = array<i32>} : memref<2x8x96xf32, #tpu.memory_space<vmem>>, vector<1x8x96xf32>,
    %88 = vector.extract_strided_slice %45 {offsets = [0, 32], sizes = [8, 32], strides = [1, 1]} : vector<8x64xf32> to vector<8x32xf32>
    %89 = vector.extract_strided_slice %43 {offsets = [0, 32], sizes = [8, 32], strides = [1, 1]} : vector<8x64xf32> to vector<8x32xf32>
    %90 = vector.extract_strided_slice %80 {offsets = [0, 32], sizes = [8, 32], strides = [1, 1]} : vector<8x64xf32> to vector<8x32xf32>
    %91 = tpu.concatenate %88, %89, %90 in 1 : vector<8x32xf32>, vector<8x32xf32>, vector<8x32xf32> -> vector<8x96xf32>
    %c1_35 = arith.constant 1 : index
    %c0_36 = arith.constant 0 : index
    %c0_37 = arith.constant 0 : index
    %92 = vector.load %arg9[%c1_35, %c0_36, %c0_37] : memref<2x8x96xf32, #tpu.memory_space<vmem>>, vector<1x8x96xf32>
    %93 = vector.shape_cast %92 : vector<1x8x96xf32> to vector<8x96xf32>
    %94 = vector.shape_cast %91 : vector<8x96xf32> to vector<1x8x96xf32>
    tpu.vector_store %arg9[%c1_35, %c0_36, %c0_37], %94 {strides = array<i32>} : memref<2x8x96xf32, #tpu.memory_space<vmem>>, vector<1x8x96xf32>,
    return
  }
}

</mosaic_0001>

<bundles_post_ra>
// kernel: tpu_custom_call.1
= control target key start
LH: loop header
LB: loop body
LE: loop exit
PB: predicated region body
PF: predicated region fallthrough
CT: control target
= control target key end

     0   :  { %14 = vsyncpa [#allocation3], 0  ;;  %s1155_s0 = inlined_call_operand.hbm [shape: f32[8,16], index: 0, kind: input, shape index: {}]   ;;  %s1156_s1 = inlined_call_operand.hbm [shape: f32[2,8,32], index: 1, kind: input, shape index: {}]   ;;  %s1157_s2 = inlined_call_operand.hbm [shape: f32[2,8,32], index: 2, kind: input, shape index: {}]   ;;  %s1158_s3 = inlined_call_operand.hbm [shape: f32[8,32], index: 3, kind: input, shape index: {}]   ;;  %s1159_s4 = inlined_call_operand.hbm [shape: f32[80,320], index: 4, kind: input, shape index: {}]   ;;  %s1160_s5 = inlined_call_operand.hbm [shape: f32[160,256], index: 5, kind: input, shape index: {}]   ;;  %s1161_s6 = inlined_call_operand.vmem [shape: f32[1,256], index: 6, kind: input, shape index: {}]   ;;  %s1162_s7 = inlined_call_operand.hbm [shape: f32[128,128], index: 7, kind: input, shape index: {}]   ;;  %s1163_s8 = inlined_call_operand.vmem [shape: f32[1,128], index: 8, kind: input, shape index: {}]   ;;  %s1164_s9 = inlined_call_operand.hbm [shape: f32[2,8,96], index: 9, kind: output, shape index: {}]  }
   0x1   :  { %15 = vsyncpa [#allocation6], 0 }
   0x2   :  { %16 = vsyncpa [#allocation9], 0 }
   0x3   :  { %17 = vsyncpa [#allocation12], 0 }
   0x4   :  { %18 = vsyncpa [#allocation4], 0  ;;  %s965_s30 = smov [#allocation5]  }
   0x5   :  { %s34_s10 = sshll.u32 %s965_s30, 4  ;;  %s35_s10 = int_to_ptr.vmem [resolvable:$true] %s34_s10 }
   0x6   :  { %s803_s11 = scalar_lea.vmem %s35_s10, 256  ;;  %p808_p1 = scmp.lt.s32.totalorder %s35_s10, %s35_s10 }
   0x7   :  { %p804_p0 = scmp.ne.s32.totalorder %s35_s10, %s803_s11  ;;  %p809_p2 = scmp.lt.s32.totalorder %s803_s11, %s803_s11 }
   0x9   :  { %p810_p3 = por %p809_p2, %p808_p1 }
   0xb   :  { %p811_p4 = pnand %p810_p3, %p804_p0 }
   0xd   :  { %814 = shalt.err (!%p811_p4)
}
   0xe   :  { %s966_s12 = smov 128   ;;  %s967_s13 = smov 8  }
   0xf   :  { %40 = dma.hbm_to_vmem [thread:$0]  %s1156_s1, 256, %s35_s10, [#allocation6], %s966_s12, %s966_s12, %s967_s13  }
  0x10   :  { %s968_s16 = smov [#allocation8]   ;;  %s969_s18 = smov [#allocation11]  }
  0x11   :  { %s59_s17 = sshll.u32 %s968_s16, 4  ;;  %s80_s19 = sshll.u32 %s969_s18, 4  ;;  %s60_s17 = int_to_ptr.vmem [resolvable:$true] %s59_s17  ;;  %s81_s19 = int_to_ptr.vmem [resolvable:$true] %s80_s19 }
  0x12   :  { %s823_s20 = scalar_lea.vmem %s60_s17, 128  ;;  %p828_p6 = scmp.lt.s32.totalorder %s60_s17, %s60_s17 }
  0x13   :  { %p824_p5 = scmp.ne.s32.totalorder %s60_s17, %s823_s20  ;;  %p829_p7 = scmp.lt.s32.totalorder %s823_s20, %s823_s20 }
  0x15   :  { %p830_p8 = por %p829_p7, %p828_p6 }
  0x17   :  { %p831_p9 = pnand %p830_p8, %p824_p5 }
  0x19   :  { %834 = shalt.err (!%p831_p9)
}
  0x1a   :  { %62 = dma.hbm_to_vmem [thread:$0]  %s1158_s3, 128, %s60_s17, [#allocation9]  }
  0x1b   :  { %s843_s23 = scalar_lea.vmem %s81_s19, 5120  ;;  %p848_p11 = scmp.lt.s32.totalorder %s81_s19, %s81_s19 }
  0x1c   :  { %p844_p10 = scmp.ne.s32.totalorder %s81_s19, %s843_s23  ;;  %p849_p12 = scmp.lt.s32.totalorder %s843_s23, %s843_s23 }
  0x1e   :  { %p850_p13 = por %p849_p12, %p848_p11 }
  0x20   :  { %p851_p0 = pnand %p850_p13, %p844_p10 }
  0x22   :  { %854 = shalt.err (!%p851_p0)
}
  0x23   :  { %s970_s1 = smov 256   ;;  %s971_s24 = smov 16  }
  0x24   :  { %86 = dma.hbm_to_vmem [thread:$0]  %s1160_s5, 5120, %s81_s19, [#allocation12], %s970_s1, %s970_s1, %s971_s24  }
  0x25   :  { %s972_s27 = smov [#allocation2]   ;;  %s973_s29 = smov [#allocation7]  }
  0x26   :  { %s25_s28 = sshll.u32 %s972_s27, 4  ;;  %s46_s3 = sshll.u32 %s973_s29, 4  ;;  %s26_s28 = int_to_ptr.vmem [resolvable:$true] %s25_s28  ;;  %s47_s3 = int_to_ptr.vmem [resolvable:$true] %s46_s3 }
  0x27   :  { %s863_s30 = scalar_lea.vmem %s26_s28, 128  ;;  %p868_p2 = scmp.lt.s32.totalorder %s26_s28, %s26_s28 }
  0x28   :  { %p864_p1 = scmp.ne.s32.totalorder %s26_s28, %s863_s30  ;;  %p869_p3 = scmp.lt.s32.totalorder %s863_s30, %s863_s30 }
  0x2a   :  { %p870_p4 = por %p869_p3, %p868_p2 }
  0x2c   :  { %p871_p5 = pnand %p870_p4, %p864_p1 }
  0x2e   :  { %874 = shalt.err (!%p871_p5)
}
  0x2f   :  { %28 = dma.hbm_to_vmem [thread:$0]  %s1155_s0, 128, %s26_s28, [#allocation3]  }
  0x30   :  { %s883_s14 = scalar_lea.vmem %s47_s3, 256  ;;  %p888_p7 = scmp.lt.s32.totalorder %s47_s3, %s47_s3 }
  0x31   :  { %p884_p6 = scmp.ne.s32.totalorder %s47_s3, %s883_s14  ;;  %p889_p8 = scmp.lt.s32.totalorder %s883_s14, %s883_s14 }
  0x33   :  { %p890_p9 = por %p889_p8, %p888_p7 }
  0x35   :  { %p891_p10 = pnand %p890_p9, %p884_p6 }
  0x37   :  { %894 = shalt.err (!%p891_p10)
}
  0x38   :  { %52 = dma.hbm_to_vmem [thread:$0]  %s1157_s2, 256, %s47_s3, [#allocation6], %s966_s12, %s966_s12, %s967_s13  }
  0x39   :  { %s974_s16 = smov [#allocation10]  }
  0x3a   :  { %s68_s17 = sshll.u32 %s974_s16, 4  ;;  %s69_s17 = int_to_ptr.vmem [resolvable:$true] %s68_s17 }
  0x3b   :  { %s903_s18 = scalar_lea.vmem %s69_s17, 3840  ;;  %p908_p12 = scmp.lt.s32.totalorder %s69_s17, %s69_s17 }
  0x3c   :  { %p904_p11 = scmp.ne.s32.totalorder %s69_s17, %s903_s18  ;;  %p909_p13 = scmp.lt.s32.totalorder %s903_s18, %s903_s18 }
  0x3e   :  { %p910_p0 = por %p909_p13, %p908_p12 }
  0x40   :  { %p911_p1 = pnand %p910_p0, %p904_p11 }
  0x42   :  { %914 = shalt.err (!%p911_p1)
}
  0x43   :  { %s975_s0 = smov 384   ;;  %s976_s19 = smov 24  }
  0x44   :  { %74 = dma.hbm_to_vmem [thread:$0]  %s1159_s4, 3840, %s69_s17, [#allocation9], %s975_s0, %s975_s0, %s976_s19  }
  0x45   :  { %s977_s22 = smov [#allocation13]  }
  0x46   :  { %s94_s23 = sshll.u32 %s977_s22, 4  ;;  %s95_s23 = int_to_ptr.vmem [resolvable:$true] %s94_s23 }
  0x47   :  { %s923_s2 = scalar_lea.vmem %s95_s23, 2048  ;;  %p928_p3 = scmp.lt.s32.totalorder %s95_s23, %s95_s23 }
  0x48   :  { %p924_p2 = scmp.ne.s32.totalorder %s95_s23, %s923_s2  ;;  %p929_p4 = scmp.lt.s32.totalorder %s923_s2, %s923_s2 }
  0x4a   :  { %p930_p5 = por %p929_p4, %p928_p3 }
  0x4c   :  { %p931_p6 = pnand %p930_p5, %p924_p2 }
  0x4e   :  { %934 = shalt.err (!%p931_p6)
}
  0x4f   :  { %100 = dma.hbm_to_vmem [thread:$0]  %s1162_s7, 2048, %s95_s23, [#allocation12], %s966_s12, %s966_s12, %s967_s13  }
  0x50   :  { %955 = dma.done.wait [#allocation3], 128  }
  0x51   :  { %956 = vsyncadd [#allocation3], 4294967168 }
  0x52   :  { %957 = dma.done.wait [#allocation6], 512  }
  0x53   :  { %958 = vsyncadd [#allocation6], 4294966784 }
  0x54   :  { %959 = dma.done.wait [#allocation9], 3968  }
  0x55   :  { %960 = vsyncadd [#allocation9], 4294963328 }
  0x56   :  { %961 = dma.done.wait [#allocation12], 7168  }
  0x57   :  { %962 = vsyncadd [#allocation12], 4294960128  ;;  %v978_v0 = vmov 0.0   ;;  %v128_v1 = vld [vmem:[#allocation5 + $0x8] sm:$0xff]  ;;  %s979_s4 = smov 32   ;;  %v176_v3 = vld [vmem:[#allocation10 + $0xd8] sm:$0xff] }
  0x58   :  { %696 = vmatprep.subr.mxu1 %v978_v0  ;;  %247 = vmatprep.mubr.f32.mxu0 %v978_v0  ;;  %v177_v2 = vld [vmem:[#allocation10 + $0xe0] sm:$0xff]  ;;  %v178_v4 = vld [vmem:[#allocation10 + $0xe8] sm:$0xff]  ;;  %v175_v7 = vld [vmem:[#allocation10 + $0xd0] sm:$0xff]  ;;  %vm980_vm0 = vmmov 0   ;;  %vm133_vm1 = vcmask 261120   ;;  %vm147_vm2 = vcmask 130048  }
  0x59   :  { %130 = vrot.lane.b32.xlu0 %v128_v1, %s979_s4  ;;  %195 = vmatprep.subr.mxu0 %v177_v2  ;;  %v174_v5 = vld [vmem:[#allocation10 + $0xc8] sm:$0xff]  ;;  %v173_v6 = vld [vmem:[#allocation10 + $0xc0] sm:$0xff]  ;;  %v171_v8 = vld [vmem:[#allocation10 + $0xb0] sm:$0xff]  ;;  %vm179_vm3 = vcmask 654336   ;;  %s981_s7 = smov 64   ;;  %vm363_vm4 = vcmask 523264  }
  0x5a   :  { %196 = vmatpush1.msra.mxu0 %v176_v3  ;;  %697 = vmatpush3.msra.mxu1 %v178_v4  ;;  %v170_v9 = vld [vmem:[#allocation10 + $0xa8] sm:$0xff]  ;;  %v172_v10 = vld [vmem:[#allocation10 + $0xb8] sm:$0xff]  ;;  %v167_v12 = vld [vmem:[#allocation10 + $0x90] sm:$0xff]  ;;  %vm625_vm5 = vcmask 785408  }
  0x5b   :  { %197 = vmatprep.subr.mxu0 %v174_v5  ;;  %698 = vmatprep.subr.mxu1 %v978_v0  ;;  %v168_v11 = vld [vmem:[#allocation10 + $0x98] sm:$0xff]  ;;  %v169_v13 = vld [vmem:[#allocation10 + $0xa0] sm:$0xff]  ;;  %v166_v16 = vld [vmem:[#allocation10 + $0x88] sm:$0xff] }
  0x5c   :  { %198 = vmatpush1.msra.mxu0 %v173_v6  ;;  %699 = vmatpush3.msra.mxu1 %v175_v7  ;;  %v165_v14 = vld [vmem:[#allocation10 + $0x80] sm:$0xff]  ;;  %v164_v15 = vld [vmem:[#allocation10 + $0x78] sm:$0xff]  ;;  %v162_v17 = vld [vmem:[#allocation10 + $0x68] sm:$0xff] }
  0x5d   :  { %199 = vmatprep.subr.mxu0 %v171_v8  ;;  %700 = vmatprep.subr.mxu1 %v978_v0  ;;  %v161_v18 = vld [vmem:[#allocation10 + $0x60] sm:$0xff]  ;;  %v163_v19 = vld [vmem:[#allocation10 + $0x70] sm:$0xff]  ;;  %v158_v21 = vld [vmem:[#allocation10 + $0x48] sm:$0xff] }
  0x5e   :  { %200 = vmatpush1.msra.mxu0 %v170_v9  ;;  %701 = vmatpush3.msra.mxu1 %v172_v10  ;;  %v159_v20 = vld [vmem:[#allocation10 + $0x50] sm:$0xff]  ;;  %v160_v22 = vld [vmem:[#allocation10 + $0x58] sm:$0xff]  ;;  %v157_v25 = vld [vmem:[#allocation10 + $0x40] sm:$0xff] }
  0x5f   :  { %201 = vmatprep.subr.mxu0 %v168_v11  ;;  %702 = vmatprep.subr.mxu1 %v978_v0  ;;  %v156_v23 = vld [vmem:[#allocation10 + $0x38] sm:$0xff]  ;;  %v155_v24 = vld [vmem:[#allocation10 + $0x30] sm:$0xff]  ;;  %v153_v26 = vld [vmem:[#allocation10 + $0x20] sm:$0xff] }
  0x60   :  { %202 = vmatpush1.msra.mxu0 %v167_v12  ;;  %703 = vmatpush3.msra.mxu1 %v169_v13  ;;  %v152_v27 = vld [vmem:[#allocation10 + $0x18] sm:$0xff]  ;;  %v154_v28 = vld [vmem:[#allocation10 + $0x28] sm:$0xff]  ;;  %v149_v30 = vld [vmem:[#allocation10] sm:$0xff] }
  0x61   :  { %203 = vmatprep.subr.mxu0 %v165_v14  ;;  %704 = vmatprep.subr.mxu1 %v978_v0  ;;  %v150_v29 = vld [vmem:[#allocation10 + $0x8] sm:$0xff]  ;;  %v151_v31 = vld [vmem:[#allocation10 + $0x10] sm:$0xff]  ;;  %v126_v33 = vld [vmem:[#allocation5] sm:$0xff] }
  0x62   :  { %204 = vmatpush1.msra.mxu0 %v164_v15  ;;  %705 = vmatpush3.msra.mxu1 %v166_v16  ;;  %v137_v32 = vld [vmem:[#allocation7 + $0x8] sm:$0xff]  ;;  %v135_v40 = vld [vmem:[#allocation7] sm:$0xff]  ;;  %v395_v53 = vld [vmem:[#allocation11 + $0xf0] sm:$0xff] }
  0x63   :  { %205 = vmatprep.subr.mxu0 %v162_v17  ;;  %706 = vmatprep.subr.mxu1 %v978_v0  ;;  %v124_v36 = vld [vmem:[#allocation2] sm:$0xff]  ;;  %v396_v52 = vld [vmem:[#allocation11 + $0xf8] sm:$0xff]  ;;  %v394_v54 = vld [vmem:[#allocation11 + $0xe8] sm:$0xff] }
  0x64   :  { %206 = vmatpush1.msra.mxu0 %v161_v18  ;;  %707 = vmatpush3.msra.mxu1 %v163_v19  ;;  %v393_v55 = vld [vmem:[#allocation11 + $0xe0] sm:$0xff]  ;;  %v392_v56 = vld [vmem:[#allocation11 + $0xd8] sm:$0xff]  ;;  %v391_v57 = vld [vmem:[#allocation11 + $0xd0] sm:$0xff] }
  0x65   :  { %207 = vmatprep.subr.mxu0 %v159_v20  ;;  %708 = vmatprep.subr.mxu1 %v978_v0  ;;  %v390_v58 = vld [vmem:[#allocation11 + $0xc8] sm:$0xff]  ;;  %v389_v59 = vld [vmem:[#allocation11 + $0xc0] sm:$0xff]  ;;  %v388_v60 = vld [vmem:[#allocation11 + $0xb8] sm:$0xff] }
  0x66   :  { %208 = vmatpush1.msra.mxu0 %v158_v21  ;;  %709 = vmatpush3.msra.mxu1 %v160_v22  ;;  %v387_v61 = vld [vmem:[#allocation11 + $0xb0] sm:$0xff]  ;;  %v386_v62 = vld [vmem:[#allocation11 + $0xa8] sm:$0xff]  ;;  %v385_v63 = vld [vmem:[#allocation11 + $0xa0] sm:$0xff] }
  0x67   :  { %209 = vmatprep.subr.mxu0 %v156_v23  ;;  %710 = vmatprep.subr.mxu1 %v978_v0  ;;  %v384_v1 = vld [vmem:[#allocation11 + $0x98] sm:$0xff]  ;;  %v383_v2 = vld [vmem:[#allocation11 + $0x90] sm:$0xff]  ;;  %v382_v3 = vld [vmem:[#allocation11 + $0x88] sm:$0xff] }
  0x68   :  { %210 = vmatpush1.msra.mxu0 %v155_v24  ;;  %711 = vmatpush3.msra.mxu1 %v157_v25  ;;  %v381_v4 = vld [vmem:[#allocation11 + $0x80] sm:$0xff]  ;;  %v380_v5 = vld [vmem:[#allocation11 + $0x78] sm:$0xff]  ;;  %v379_v6 = vld [vmem:[#allocation11 + $0x70] sm:$0xff] }
  0x69   :  { %211 = vmatprep.subr.mxu0 %v153_v26  ;;  %712 = vmatprep.subr.mxu1 %v978_v0  ;;  %v378_v7 = vld [vmem:[#allocation11 + $0x68] sm:$0xff]  ;;  %v377_v8 = vld [vmem:[#allocation11 + $0x60] sm:$0xff]  ;;  %v376_v9 = vld [vmem:[#allocation11 + $0x58] sm:$0xff] }
  0x6a   :  { %212 = vmatpush1.msra.mxu0 %v152_v27  ;;  %713 = vmatpush3.msra.mxu1 %v154_v28  ;;  %v375_v10 = vld [vmem:[#allocation11 + $0x50] sm:$0xff]  ;;  %v374_v11 = vld [vmem:[#allocation11 + $0x48] sm:$0xff]  ;;  %v373_v12 = vld [vmem:[#allocation11 + $0x40] sm:$0xff] }
  0x6b   :  { %213 = vmatprep.subr.mxu0 %v150_v29  ;;  %714 = vmatprep.subr.mxu1 %v978_v0  ;;  %v372_v13 = vld [vmem:[#allocation11 + $0x38] sm:$0xff]  ;;  %v371_v14 = vld [vmem:[#allocation11 + $0x30] sm:$0xff]  ;;  %v370_v15 = vld [vmem:[#allocation11 + $0x28] sm:$0xff] }
  0x6c   :  { %214 = vmatpush1.msra.mxu0 %v149_v30  ;;  %715 = vmatpush3.msra.mxu1 %v151_v31  ;;  %v369_v16 = vld [vmem:[#allocation11 + $0x20] sm:$0xff]  ;;  %v368_v17 = vld [vmem:[#allocation11 + $0x18] sm:$0xff]  ;;  %v367_v18 = vld [vmem:[#allocation11 + $0x10] sm:$0xff] }
  0x6d   :  { %716 = vmatprep.mubr.msk.f32.mxu1 %vm980_vm0, %v978_v0  ;;  %719 = vmatprep.subr.mxu1 %v978_v0  ;;  %v366_v19 = vld [vmem:[#allocation11 + $0x8] sm:$0xff]  ;;  %v365_v20 = vld [vmem:[#allocation11] sm:$0xff]  ;;  %v404_v21 = vld [vmem:[#allocation11 + $0x138] sm:$0xff] }
  0x6e   :  { %139 = vrot.lane.b32.xlu1 %v137_v32, %s979_s4  ;;  %420 = vmatprep.subr.mxu0 %v396_v52  ;;  %v403_v22 = vld [vmem:[#allocation11 + $0x130] sm:$0xff]  ;;  %v402_v23 = vld [vmem:[#allocation11 + $0x128] sm:$0xff]  ;;  %v401_v24 = vld [vmem:[#allocation11 + $0x120] sm:$0xff] }
  0x6f   :  { %v400_v25 = vld [vmem:[#allocation11 + $0x118] sm:$0xff]  ;;  %v399_v26 = vld [vmem:[#allocation11 + $0x110] sm:$0xff]  ;;  %v398_v27 = vld [vmem:[#allocation11 + $0x108] sm:$0xff] }
  0xcb   :  { %v131_v34 = vpop.permute.xlu0 %130 }
  0xcc   :  { %v134_v35 = vsel %vm133_vm1, %v126_v33, %v131_v34 }
  0xcd   :  { %144 = vrot.lane.b32.xlu0 %v134_v35, %s971_s24 }
  0xe0   :  { %v140_v39 = vpop.permute.xlu1 %139 }
  0xe1   :  { %v142_v41 = vsel %vm133_vm1, %v135_v40, %v140_v39 }
  0xe2   :  { %347 = vrot.lane.b32.xlu0 %v142_v41, %s981_s7 }
 0x13f   :  { %v145_v37 = vpop.permute.xlu0 %144 }
 0x140   :  { %v148_v38 = vsel %vm147_vm2, %v124_v36, %v145_v37 }
 0x141   :  { %661 = vmatmul.mubr.msk.f32.vlgmr.msra.gmra.mxu0 %vm179_vm3, %v148_v38  ;;  %717 = vmatmul.mubr.msk.f32.vlgmr.msra.gmra.mxu1 %vm179_vm3, %v148_v38 }
 0x142   :  { %751 = vmatprep.mubr.msk.f32.mxu1 %vm980_vm0, %v978_v0  ;;  %421 = vmatpush1.msra.mxu0 %v395_v53 }
 0x143   :  { %422 = vmatprep.subr.mxu0 %v394_v54  ;;  %v405_v54 = vld [vmem:[%s1161_s6] sm:$0x3]  ;;  %s982_s6 = smov 96  }
 0x144   :  { %423 = vmatpush1.msra.mxu0 %v393_v55 }
 0x145   :  { %424 = vmatprep.subr.mxu0 %v392_v56 }
 0x146   :  { %425 = vmatpush1.msra.mxu0 %v391_v57 }
 0x147   :  { %426 = vmatprep.subr.mxu0 %v390_v58  ;;  %v529_v58 = vld [vmem:[#allocation13 + $0x78] sm:$0xff] }
 0x148   :  { %427 = vmatpush1.msra.mxu0 %v389_v59  ;;  %v528_v59 = vld [vmem:[#allocation13 + $0x70] sm:$0xff]  ;;  %720 = vmatpush3.msra.mxu1 %v529_v58 }
 0x149   :  { %428 = vmatprep.subr.mxu0 %v388_v60  ;;  %721 = vmatprep.subr.mxu1 %v978_v0  ;;  %v527_v60 = vld [vmem:[#allocation13 + $0x68] sm:$0xff] }
 0x14a   :  { %429 = vmatpush1.msra.mxu0 %v387_v61  ;;  %722 = vmatpush3.msra.mxu1 %v528_v59  ;;  %v526_v61 = vld [vmem:[#allocation13 + $0x60] sm:$0xff] }
 0x14b   :  { %430 = vmatprep.subr.mxu0 %v386_v62  ;;  %723 = vmatprep.subr.mxu1 %v978_v0  ;;  %v525_v62 = vld [vmem:[#allocation13 + $0x58] sm:$0xff] }
 0x14c   :  { %431 = vmatpush1.msra.mxu0 %v385_v63  ;;  %724 = vmatpush3.msra.mxu1 %v527_v60  ;;  %v524_v63 = vld [vmem:[#allocation13 + $0x50] sm:$0xff] }
 0x14d   :  { %432 = vmatprep.subr.mxu0 %v384_v1  ;;  %725 = vmatprep.subr.mxu1 %v978_v0  ;;  %v523_v1 = vld [vmem:[#allocation13 + $0x48] sm:$0xff] }
 0x14e   :  { %433 = vmatpush1.msra.mxu0 %v383_v2  ;;  %726 = vmatpush3.msra.mxu1 %v526_v61 }
 0x14f   :  { %434 = vmatprep.subr.mxu0 %v382_v3  ;;  %727 = vmatprep.subr.mxu1 %v978_v0  ;;  %v522_v3 = vld [vmem:[#allocation13 + $0x40] sm:$0xff] }
 0x150   :  { %435 = vmatpush1.msra.mxu0 %v381_v4  ;;  %728 = vmatpush3.msra.mxu1 %v525_v62  ;;  %v521_v4 = vld [vmem:[#allocation13 + $0x38] sm:$0xff] }
 0x151   :  { %436 = vmatprep.subr.mxu0 %v380_v5  ;;  %729 = vmatprep.subr.mxu1 %v978_v0  ;;  %v520_v5 = vld [vmem:[#allocation13 + $0x30] sm:$0xff] }
 0x152   :  { %437 = vmatpush1.msra.mxu0 %v379_v6  ;;  %730 = vmatpush3.msra.mxu1 %v524_v63  ;;  %v519_v6 = vld [vmem:[#allocation13 + $0x28] sm:$0xff] }
 0x153   :  { %438 = vmatprep.subr.mxu0 %v378_v7  ;;  %731 = vmatprep.subr.mxu1 %v978_v0  ;;  %v518_v7 = vld [vmem:[#allocation13 + $0x20] sm:$0xff] }
 0x154   :  { %439 = vmatpush1.msra.mxu0 %v377_v8  ;;  %v348_v40 = vpop.permute.xlu0 %347  ;;  %732 = vmatpush3.msra.mxu1 %v523_v1  ;;  %v517_v8 = vld [vmem:[#allocation13 + $0x18] sm:$0xff] }
 0x155   :  { %440 = vmatprep.subr.mxu0 %v376_v9  ;;  %733 = vmatprep.subr.mxu1 %v978_v0  ;;  %v516_v9 = vld [vmem:[#allocation13 + $0x10] sm:$0xff] }
 0x156   :  { %441 = vmatpush1.msra.mxu0 %v375_v10  ;;  %734 = vmatpush3.msra.mxu1 %v522_v3 }
 0x157   :  { %442 = vmatprep.subr.mxu0 %v374_v11  ;;  %735 = vmatprep.subr.mxu1 %v978_v0 }
 0x158   :  { %443 = vmatpush1.msra.mxu0 %v373_v12  ;;  %736 = vmatpush3.msra.mxu1 %v521_v4 }
 0x159   :  { %444 = vmatprep.subr.mxu0 %v372_v13  ;;  %737 = vmatprep.subr.mxu1 %v978_v0 }
 0x15a   :  { %445 = vmatpush1.msra.mxu0 %v371_v14  ;;  %738 = vmatpush3.msra.mxu1 %v520_v5 }
 0x15b   :  { %446 = vmatprep.subr.mxu0 %v370_v15  ;;  %739 = vmatprep.subr.mxu1 %v978_v0 }
 0x15c   :  { %447 = vmatpush1.msra.mxu0 %v369_v16  ;;  %740 = vmatpush3.msra.mxu1 %v519_v6  ;;  %v515_v16 = vld [vmem:[#allocation13 + $0x8] sm:$0xff] }
 0x15d   :  { %448 = vmatprep.subr.mxu0 %v368_v17  ;;  %741 = vmatprep.subr.mxu1 %v978_v0  ;;  %v514_v17 = vld [vmem:[#allocation13] sm:$0xff] }
 0x15e   :  { %449 = vmatpush1.msra.mxu0 %v367_v18  ;;  %742 = vmatpush3.msra.mxu1 %v518_v7 }
 0x15f   :  { %450 = vmatprep.subr.mxu0 %v366_v19  ;;  %743 = vmatprep.subr.mxu1 %v978_v0 }
 0x160   :  { %451 = vmatpush1.msra.mxu0 %v365_v20  ;;  %744 = vmatpush3.msra.mxu1 %v517_v8 }
 0x161   :  { %476 = vmatprep.subr.mxu0 %v404_v21  ;;  %745 = vmatprep.subr.mxu1 %v978_v0 }
 0x162   :  { %477 = vmatpush2.msra.mxu0 %v403_v22  ;;  %746 = vmatpush3.msra.mxu1 %v516_v9 }
 0x163   :  { %478 = vmatprep.subr.mxu0 %v402_v23  ;;  %747 = vmatprep.subr.mxu1 %v978_v0 }
 0x164   :  { %479 = vmatpush2.msra.mxu0 %v401_v24  ;;  %748 = vmatpush3.msra.mxu1 %v515_v16 }
 0x165   :  { %480 = vmatprep.subr.mxu0 %v400_v25  ;;  %749 = vmatprep.subr.mxu1 %v978_v0  ;;  %v666_v0 = vld [vmem:[%s1163_s8] ss:$0 sm:$0xff]  ;;  %s983_s8 = smov [#allocation14]  }
 0x166   :  { %481 = vmatpush2.msra.mxu0 %v399_v26  ;;  %750 = vmatpush3.msra.mxu1 %v514_v17  ;;  %s646_s29 = sshll.u32 %s983_s8, 4  ;;  %s647_s29 = int_to_ptr.vmem [resolvable:$true] %s646_s29 }
 0x167   :  { %482 = vmatprep.subr.mxu0 %v398_v27  ;;  %s935_s3 = scalar_lea.vmem %s647_s29, 256  ;;  %p940_p8 = scmp.lt.s32.totalorder %s647_s29, %s647_s29 }
 0x168   :  { %p936_p7 = scmp.ne.s32.totalorder %s647_s29, %s935_s3  ;;  %p941_p9 = scmp.lt.s32.totalorder %s935_s3, %s935_s3 }
 0x16a   :  { %p942_p10 = por %p941_p9, %p940_p8 }
 0x16c   :  { %p943_p11 = pnand %p942_p10, %p936_p7 }
 0x201   :  { %v249_v42 = vpop.f32.mrf.mxu0  ;;  %v320_v43 = vpop.f32.mrf.mxu1 }
 0x202   :  { %v663_v44 = vmul.f32 -1.442695, %v249_v42  ;;  %339 = vrot.lane.b32.xlu1 %v320_v43, %s981_s7 }
 0x203   :  { %v718_v45 = vpop.f32.mrf.mxu1  ;;  %v1088_v46 = vpop.f32.mrf.mxu0 }
 0x204   :  { %773 = vpow2.f32 %v663_v44  ;;  %v397_v44 = vld [vmem:[#allocation11 + $0x100] sm:$0xff]  ;;  %v125_v45 = vld [vmem:[#allocation8] sm:$0xff] }
 0x205   :  { %775 = vtanh.f32 %v1088_v46  ;;  %483 = vmatpush2.msra.mxu0 %v397_v44  ;;  %664 = vmatprep.mubr.msk.f32.mxu0 %vm133_vm1, %v125_v45 }
 0x211   :  { %v774_v47 = vpop.eup %773 }
 0x212   :  { %v327_v48 = vadd.f32 1.0, %v774_v47  ;;  %v776_v49 = vpop.eup %775 }
 0x214   :  { %777 = vrcp.f32 %v327_v48 }
 0x215   :  { %779 = vrcp.f32 %v1088_v46 }
 0x221   :  { %v1091_v50 = vpop.eup %777 }
 0x222   :  { %v351_v51 = vmul.f32 %v1091_v50, %v776_v49  ;;  %v780_v28 = vpop.eup %779 }
 0x223   :  { %v332_v29 = vmul.f32 %v780_v28, %v1088_v46 }
 0x224   :  { %353 = vrot.lane.b32.xlu1 %v351_v51, %s981_s7  ;;  %v407_v51 = vlaneseq }
 0x225   :  { %v333_v30 = vsub.f32 2.0, %v332_v29 }
 0x226   :  { %v408_v52 = vshrl.u32 %v407_v51, 7 }
 0x227   :  { %v334_v31 = vmul.f32 %v780_v28, %v333_v30 }
 0x228   :  { %v413_v53 = vsub.s32 1, %v408_v52  ;;  %v409_v10 = vsub.s32 0, %v408_v52 }
 0x229   :  { %v335_v32 = vmul.f32 %v334_v31, %v1088_v46 }
 0x22a   :  { %v410_v11 = vrot.slane %v405_v54, %v409_v10 }
 0x22b   :  { %v336_v34 = vsub.f32 2.0, %v335_v32 }
 0x22d   :  { %v337_v36 = vmul.f32 %v336_v34, %v334_v31 }
 0x274   :  { %v340_v33 = vpop.permute.xlu1 %339 }
 0x275   :  { %v342_v35 = vsub.f32 %v1088_v46, %v340_v33 }
 0x277   :  { %v343_v37 = vmul.f32 %v342_v35, %v337_v36 }
 0x279   :  { %v344_v38 = vand.u32 2147483647, %v343_v37 }
 0x27b   :  { %v345_v39 = vsub.f32 1.0, %v344_v38 }
 0x27d   :  { %v350_v41 = vmul.f32 %v348_v40, %v345_v39 }
 0x296   :  { %v354_v42 = vpop.permute.xlu1 %353 }
 0x297   :  { %v1099_v43 = vadd.f32 %v354_v42, %v350_v41 }
 0x299   :  { %781 = vtanh.f32 %v1099_v43 }
 0x2a6   :  { %v782_v47 = vpop.eup %781 }
 0x2a7   :  { %v1104_v48 = vmul.f32 %v782_v47, %v1091_v50  ;;  %v414_v50 = vrot.slane %v405_v54, %v413_v53 }
 0x2a9   :  { %360 = vrot.lane.b32.xlu0 %v1104_v48, %s981_s7 }
 0x31b   :  { %v1108_v46 = vpop.permute.xlu0 %360 }
 0x31c   :  { %v364_v49 = vsel %vm363_vm4, %v1108_v46, %v1099_v43 }
 0x31d   :  { %485 = vmatmul.mubr.f32.vlgmr.msra.gmra.mxu0 %v364_v49 }
 0x3dd   :  { %v486_v55 = vpop.f32.mrf.mxu0 }
 0x3de   :  { %v487_v12 = vadd.f32 %v486_v55, %v410_v11 }
 0x3df   :  { %v488_v56 = vpop.f32.mrf.mxu0 }
 0x3e0   :  { %v489_v57 = vadd.f32 %v488_v56, %v414_v50  ;;  %v665_v13 = vmul.f32 -1.442695, %v487_v12 }
 0x3e2   :  { %499 = vrot.lane.b32.xlu1 %v489_v57, %s981_s7  ;;  %783 = vtanh.f32 %v489_v57 }
 0x3e3   :  { %785 = vpow2.f32 %v665_v13 }
 0x3ef   :  { %v784_v2 = vpop.eup %783 }
 0x3f0   :  { %504 = vrot.lane.b32.xlu0 %v784_v2, %s981_s7  ;;  %v786_v14 = vpop.eup %785 }
 0x3f1   :  { %v494_v15 = vadd.f32 1.0, %v786_v14 }
 0x3f3   :  { %787 = vrcp.f32 %v494_v15 }
 0x400   :  { %v788_v18 = vpop.eup %787 }
 0x454   :  { %v500_v19 = vpop.permute.xlu1 %499 }
 0x455   :  { %v502_v20 = vmul.f32 %v788_v18, %v500_v19 }
 0x457   :  { %509 = vrot.lane.b32.xlu1 %v502_v20, %s981_s7 }
 0x45b   :  { %620 = vrot.lane.b32.xlu1 %v1099_v43, %s982_s6 }
 0x45f   :  { %630 = vrot.lane.b32.xlu1 %v1099_v43, %s981_s7 }
 0x462   :  { %v505_v21 = vpop.permute.xlu0 %504 }
 0x463   :  { %v507_v22 = vmul.f32 %v788_v18, %v505_v21 }
 0x4c9   :  { %v510_v23 = vpop.permute.xlu1 %509 }
 0x4ca   :  { %v512_v24 = vadd.f32 %v510_v23, %v507_v22 }
 0x4cc   :  { %v513_v25 = vsel %vm363_vm4, %v502_v20, %v512_v24 }
 0x4cd   :  { %752 = vmatmul.mubr.f32.vlgmr.msra.gmra.mxu1 %v513_v25  ;;  %v621_v33 = vpop.permute.xlu1 %620 }
 0x4ce   :  { %v623_v37 = vsel %vm133_vm1, %v1108_v46, %v621_v33 }
 0x4d1   :  { %v631_v40 = vpop.permute.xlu1 %630 }
 0x58d   :  { %v603_v26 = vpop.f32.mrf.mxu1 }
 0x58e   :  { %v604_v27 = vadd.f32 %v666_v0, %v603_v26 }
 0x58f   :  { %v753_v28 = vpop.f32.mrf.mxu1 }
 0x590   :  { %789 = vtanh.f32 %v604_v27  ;;  %v667_v30 = vmul.f32 -1.442695, %v604_v27 }
 0x592   :  { %791 = vpow2.f32 %v667_v30 }
 0x59d   :  { %v790_v29 = vpop.eup %789 }
 0x59e   :  { %615 = vrot.lane.b32.xlu0 %v790_v29, %s981_s7 }
 0x59f   :  { %v792_v31 = vpop.eup %791 }
 0x5a0   :  { %v610_v32 = vadd.f32 1.0, %v792_v31 }
 0x5a2   :  { %627 = vrot.lane.b32.xlu0 %v1104_v48, %s979_s4  ;;  %793 = vrcp.f32 %v610_v32 }
 0x5af   :  { %v794_v34 = vpop.eup %793 }
 0x610   :  { %v616_v35 = vpop.permute.xlu0 %615 }
 0x611   :  { %v618_v36 = vmul.f32 %v794_v34, %v616_v35 }
 0x613   :  { %v624_v38 = vsel %vm363_vm4, %v623_v37, %v618_v36  ;;  %634 = vrot.lane.b32.xlu0 %v618_v36, %s982_s6 }
 0x614   :  { %626 = vst.msk [vmem:[#allocation14] sm:$0xff] %vm625_vm5, %v624_v38  ;;  %v628_v39 = vpop.permute.xlu0 %627 }
 0x615   :  { %v637_v41 = vsel %vm133_vm1, %v628_v39, %v631_v40 }
 0x685   :  { %v635_v42 = vpop.permute.xlu0 %634 }
 0x686   :  { %v638_v43 = vsel %vm363_vm4, %v637_v41, %v635_v42 }
 0x687   :  { %640 = vst.msk [vmem:[#allocation14 + $0x8] sm:$0xff] %vm625_vm5, %v638_v43 }
 0x688   :  { %946 = shalt.err (!%p943_p11)
}
 0x689   :  { %652 = dma.vmem_to_hbm [thread:$0]  %s647_s29, 256, %s1164_s9, [#allocation4], %s966_s12, %s966_s12, %s967_s13  }
 0x68a   :  { %963 = dma.done.wait [#allocation4], 256  }
 0x68b   :  { %964 = vsyncadd [#allocation4], 4294967040 }
 0x68c   :  { %656 = vsyncpa [#allocation3], 1 }
 0x68d   :  { %657 = vsyncpa [#allocation6], 1 }
 0x68e   :  { %658 = vsyncpa [#allocation9], 1 }
 0x68f   :  { %659 = vsyncpa [#allocation12], 1 }
 0x690   :  { %660 = vsyncpa [#allocation4], 1 }

</bundles_post_ra>
